<compile_context>
chip_gen: v7x
topology: tpu7x:2x2x1
jax: 0.10.0
libtpu: 0.0.40
codegen_flags: <defaults>
</compile_context>

<pallas_src>
import functools

import jax
import jax.numpy as jnp
from jax.experimental import pallas as pl
from jax.experimental.pallas import tpu as pltpu


def _round_up(v, m):
    return (v + m - 1) // m * m


# ----------------------------------------------------------------------------
# Kernel 1:  hw_tile = relu( (A_tile @ X) @ W1 + b1 ) @ W2        (bf16 out)
# ----------------------------------------------------------------------------
def gcn_layer1_kernel(a_ref, x_ref, w1_ref, b1_ref, w2_ref, hw_ref):
    # a_ref : (TM, NP) bf16   x_ref : (NP, FP) bf16   w1_ref: (FP, H) bf16
    # b1_ref: (1,  H ) f32    w2_ref: (H,  CP) bf16   hw_ref: (TM, CP) bf16
    ax = jnp.dot(a_ref[...], x_ref[...],
                 preferred_element_type=jnp.float32)                 # (TM, FP)
    h = jnp.dot(ax.astype(jnp.bfloat16), w1_ref[...],
                preferred_element_type=jnp.float32) + b1_ref[...]    # (TM, H)
    h = jnp.maximum(h, 0.0)
    hw = jnp.dot(h.astype(jnp.bfloat16), w2_ref[...],
                 preferred_element_type=jnp.float32)                 # (TM, CP)
    hw_ref[...] = hw.astype(jnp.bfloat16)


# ----------------------------------------------------------------------------
# Kernel 2:  out_tile = log_softmax( A_tile @ hW2 + b2 )  (masked to C classes)
# ----------------------------------------------------------------------------
def gcn_layer2_kernel(a_ref, hw_ref, b2_ref, out_ref, *, num_classes):
    # a_ref : (TM, NP) bf16   hw_ref: (NP, CP) bf16   b2_ref: (1, CP) f32
    # out_ref: (TM, CP) f32
    z = jnp.dot(a_ref[...], hw_ref[...],
                preferred_element_type=jnp.float32) + b2_ref[...]    # (TM, CP)
    col = jax.lax.broadcasted_iota(jnp.int32, z.shape, 1)
    valid = col < num_classes
    zm = jnp.where(valid, z, -jnp.inf)                 # padded cols excluded
    m = jnp.max(zm, axis=-1, keepdims=True)
    e = jnp.exp(zm - m)                                # padded cols -> 0
    s = jnp.sum(e, axis=-1, keepdims=True)
    out_ref[...] = z - m - jnp.log(s)                  # lane-dense store


# ----------------------------------------------------------------------------
# Wrapper: pad / cast, row-tiled grid, two pallas_calls
# ----------------------------------------------------------------------------
def gcn_forward_pallas(a_hat, x, w1, b1, w2, b2, *, tile_rows=None):
    n, f = x.shape
    h_dim = w1.shape[1]
    c = w2.shape[1]

    # Row tile: 256 rows for big graphs (fits v7x's smaller VMEM with bf16 A),
    # otherwise the full (8-aligned) array in one block.
    if tile_rows is None:
        tile_rows = 256 if n >= 256 else _round_up(max(n, 1), 8)
    tm = tile_rows
    np_ = _round_up(max(n, 8), tm)          # padded node count (multiple of TM)
    fp = _round_up(f, 128)                  # lane-dense feature dim
    cp = _round_up(c, 128)                  # lane-dense class dim

    f32 = jnp.float32
    bf16 = jnp.bfloat16

    # Zero-padded, bf16-cast operands (zero padding is exact zero-math).
    a_p = jnp.zeros((np_, np_), bf16).at[:n, :n].set(a_hat.astype(bf16))
    x_p = jnp.zeros((np_, fp), bf16).at[:n, :f].set(x.astype(bf16))
    w1_p = jnp.zeros((fp, h_dim), bf16).at[:f, :].set(w1.astype(bf16))
    b1_p = b1.astype(f32).reshape(1, h_dim)
    w2_p = jnp.zeros((h_dim, cp), bf16).at[:, :c].set(w2.astype(bf16))
    b2_p = jnp.zeros((1, cp), f32).at[:, :c].set(b2.astype(f32).reshape(1, c))

    grid = (np_ // tm,)
    cparams = pltpu.CompilerParams(
        dimension_semantics=("parallel",),          # megacore on v7x
        vmem_limit_bytes=48 * 1024 * 1024,          # < v7x 64 MiB physical
    )

    # ---- layer 1 (+ h @ W2 fusion): per-row-tile, A tiles double-buffered ----
    hw = pl.pallas_call(
        gcn_layer1_kernel,
        out_shape=jax.ShapeDtypeStruct((np_, cp), bf16),
        grid=grid,
        in_specs=[
            pl.BlockSpec((tm, np_), lambda i: (i, 0)),     # A row tile
            pl.BlockSpec((np_, fp), lambda i: (0, 0)),     # X (resident)
            pl.BlockSpec((fp, h_dim), lambda i: (0, 0)),   # W1
            pl.BlockSpec((1, h_dim), lambda i: (0, 0)),    # b1
            pl.BlockSpec((h_dim, cp), lambda i: (0, 0)),   # W2
        ],
        out_specs=pl.BlockSpec((tm, cp), lambda i: (i, 0)),
        compiler_params=cparams,
    )(a_p, x_p, w1_p, b1_p, w2_p)

    # ---- layer 2 aggregation + log_softmax ----
    out_p = pl.pallas_call(
        functools.partial(gcn_layer2_kernel, num_classes=c),
        out_shape=jax.ShapeDtypeStruct((np_, cp), f32),
        grid=grid,
        in_specs=[
            pl.BlockSpec((tm, np_), lambda i: (i, 0)),     # A row tile
            pl.BlockSpec((np_, cp), lambda i: (0, 0)),     # hW2 (resident)
            pl.BlockSpec((1, cp), lambda i: (0, 0)),       # b2
        ],
        out_specs=pl.BlockSpec((tm, cp), lambda i: (i, 0)),
        compiler_params=cparams,
    )(a_p, hw, b2_p)

    return out_p[:n, :c]


# ----------------------------------------------------------------------------
# Plain-JAX glue: A_hat = D^-1/2 (A + I) D^-1/2   (self-loop-safe)
# ----------------------------------------------------------------------------
def build_normalized_adj(edge_index, num_nodes):
    src = edge_index[0]
    dst = edge_index[1]
    adj = jnp.zeros((num_nodes, num_nodes), jnp.float32)
    adj = adj.at[src, dst].set(1.0)
    adj = adj.at[dst, src].set(1.0)                    # nx.Graph is undirected
    eye = jnp.eye(num_nodes, dtype=jnp.float32)
    adj = adj * (1.0 - eye) + eye                      # exactly one self-loop
    deg = jnp.sum(adj, axis=1)
    d_inv_sqrt = jnp.where(deg > 0, 1.0 / jnp.sqrt(deg), 0.0)
    return adj * d_inv_sqrt[:, None] * d_inv_sqrt[None, :]


def neighbors_list(edge_index, num_nodes):
    """Python glue reproducing `all_node_and_neighbors` (graph bookkeeping)."""
    # TODO(synk): the networkx graph object itself has no Pallas equivalent.
    e = jax.device_get(edge_index)
    src = [int(v) for v in e[0].tolist()]
    dst = [int(v) for v in e[1].tolist()]
    nbrs = {n: set() for n in range(num_nodes)}
    for s, d in zip(src, dst):
        if s != d:
            nbrs[s].add(d)
            nbrs[d].add(s)
    return [(n, sorted(nbrs[n])) for n in range(num_nodes)]


# ----------------------------------------------------------------------------
# TargetModel wrapper with deterministic parameter init
# ----------------------------------------------------------------------------
class TargetModelPallas:
    def __init__(self, num_node_features, num_classes, hidden=256, seed=0):
        k = jax.random.PRNGKey(seed)
        k1, k2 = jax.random.split(k)
        lim1 = (6.0 / (num_node_features + hidden)) ** 0.5
        lim2 = (6.0 / (hidden + num_classes)) ** 0.5
        self.w1 = jax.random.uniform(
            k1, (num_node_features, hidden), jnp.float32, -lim1, lim1)
        self.b1 = jnp.zeros((1, hidden), jnp.float32)
        self.w2 = jax.random.uniform(
            k2, (hidden, num_classes), jnp.float32, -lim2, lim2)
        self.b2 = jnp.zeros((1, num_classes), jnp.float32)

    def __call__(self, x, edge_index):
        n = x.shape[0]
        a_hat = build_normalized_adj(edge_index, n)
        log_probs = gcn_forward_pallas(
            a_hat, x, self.w1, self.b1, self.w2, self.b2)
        all_node_and_neighbors = neighbors_list(edge_index, n)
        return log_probs, all_node_and_neighbors


# ----------------------------------------------------------------------------
# Reference (pure jnp, f32) for sanity check
# ----------------------------------------------------------------------------
def gcn_forward_ref(a_hat, x, w1, b1, w2, b2):
    h = jnp.maximum(a_hat @ (x @ w1) + b1, 0.0)
    z = a_hat @ (h @ w2) + b2
    return jax.nn.log_softmax(z, axis=1)


if __name__ == "__main__":
    key = jax.random.PRNGKey(0)
    kx, = jax.random.split(key, 1)

    N = 16            # number of nodes (small demo)
    F = 16            # num_node_features
    C = 8             # num_classes
    HIDDEN = 256      # conv1 output size (from the module definition)

    # Deterministic node features.
    x = jax.random.normal(kx, (N, F), jnp.float32)

    # Deterministic ring + chord edges, shape (2, E) like PyG edge_index.
    src = jnp.arange(N, dtype=jnp.int32)
    ring_dst = (src + 1) % N
    chord_dst = (src + 3) % N
    edge_index = jnp.stack(
        [jnp.concatenate([src, src]), jnp.concatenate([ring_dst, chord_dst])],
        axis=0)

    model = TargetModelPallas(F, C, hidden=HIDDEN, seed=0)
    log_probs, node_and_neighbors = model(x, edge_index)
    log_probs = jax.block_until_ready(log_probs)

    # Cross-check against plain-JAX f32 reference (bf16 MXU -> loose tol).
    a_hat = build_normalized_adj(edge_index, N)
    ref = gcn_forward_ref(a_hat, x, model.w1, model.b1, model.w2, model.b2)
    assert log_probs.shape == (N, C)
    assert jnp.allclose(log_probs, ref, atol=3e-2, rtol=3e-2), "mismatch vs ref"
    assert len(node_and_neighbors) == N

    print("KERNEL_OK")
</pallas_src>

<mosaic_0001>
module attributes {stable_mosaic.version = 11 : i64} {
  func.func @gcn_layer1_kernel(%arg0: i32, %arg1: memref<16x16xbf16, #tpu.memory_space<vmem>>, %arg2: memref<16x128xbf16, #tpu.memory_space<vmem>>, %arg3: memref<128x256xbf16, #tpu.memory_space<vmem>>, %arg4: memref<1x256xf32, #tpu.memory_space<vmem>>, %arg5: memref<256x128xbf16, #tpu.memory_space<vmem>>, %arg6: memref<16x128xbf16, #tpu.memory_space<vmem>>) attributes {dimension_semantics = [#tpu.dimension_semantics<parallel>], iteration_bounds = array<i64: 1>, scalar_prefetch = 0 : i64, scratch_operands = 0 : i64, tpu.core_type = #tpu.core_type<tc>, window_params = [{transform_indices = @transform_0, window_bounds = array<i64: 16, 16>}, {pipeline_mode = #tpu.pipeline_mode<synchronous>, transform_indices = @transform_1, window_bounds = array<i64: 16, 128>}, {pipeline_mode = #tpu.pipeline_mode<synchronous>, transform_indices = @transform_2, window_bounds = array<i64: 128, 256>}, {pipeline_mode = #tpu.pipeline_mode<synchronous>, transform_indices = @transform_3, window_bounds = array<i64: 1, 256>}, {pipeline_mode = #tpu.pipeline_mode<synchronous>, transform_indices = @transform_4, window_bounds = array<i64: 256, 128>}, {transform_indices = @transform_5, window_bounds = array<i64: 16, 128>}]} {
    %c0 = arith.constant 0 : index
    %c0_0 = arith.constant 0 : index
    %0 = vector.load %arg1[%c0, %c0_0] : memref<16x16xbf16, #tpu.memory_space<vmem>>, vector<16x16xbf16>
    %c0_1 = arith.constant 0 : index
    %c0_2 = arith.constant 0 : index
    %1 = vector.load %arg2[%c0_1, %c0_2] : memref<16x128xbf16, #tpu.memory_space<vmem>>, vector<16x128xbf16>
    %cst = arith.constant dense<0.000000e+00> : vector<16x128xf32>
    %2 = tpu.matmul %0, %1, %cst {dimension_numbers = #tpu.dot_dimension_numbers<[1], [0], [0], [1], [0, 0, 1, 1], [], []>} : vector<16x16xbf16>, vector<16x128xbf16>, vector<16x128xf32> -> vector<16x128xf32>
    %3 = arith.truncf %2 : vector<16x128xf32> to vector<16x128xbf16>
    %c0_3 = arith.constant 0 : index
    %c0_4 = arith.constant 0 : index
    %4 = vector.load %arg3[%c0_3, %c0_4] : memref<128x256xbf16, #tpu.memory_space<vmem>>, vector<128x256xbf16>
    %cst_5 = arith.constant dense<0.000000e+00> : vector<16x256xf32>
    %5 = tpu.matmul %3, %4, %cst_5 {dimension_numbers = #tpu.dot_dimension_numbers<[1], [0], [0], [1], [0, 0, 1, 1], [], []>} : vector<16x128xbf16>, vector<128x256xbf16>, vector<16x256xf32> -> vector<16x256xf32>
    %c0_6 = arith.constant 0 : index
    %c0_7 = arith.constant 0 : index
    %6 = vector.load %arg4[%c0_6, %c0_7] : memref<1x256xf32, #tpu.memory_space<vmem>>, vector<1x256xf32>
    %7 = vector.broadcast %6 : vector<1x256xf32> to vector<16x256xf32>
    %8 = arith.addf %5, %7 : vector<16x256xf32>
    %cst_8 = arith.constant 0.000000e+00 : f32
    %9 = vector.broadcast %cst_8 : f32 to vector<16x256xf32>
    %10 = arith.maximumf %8, %9 : vector<16x256xf32>
    %11 = arith.truncf %10 : vector<16x256xf32> to vector<16x256xbf16>
    %c0_9 = arith.constant 0 : index
    %c0_10 = arith.constant 0 : index
    %12 = vector.load %arg5[%c0_9, %c0_10] : memref<256x128xbf16, #tpu.memory_space<vmem>>, vector<256x128xbf16>
    %cst_11 = arith.constant dense<0.000000e+00> : vector<16x128xf32>
    %13 = tpu.matmul %11, %12, %cst_11 {dimension_numbers = #tpu.dot_dimension_numbers<[1], [0], [0], [1], [0, 0, 1, 1], [], []>} : vector<16x256xbf16>, vector<256x128xbf16>, vector<16x128xf32> -> vector<16x128xf32>
    %14 = arith.truncf %13 : vector<16x128xf32> to vector<16x128xbf16>
    %c0_12 = arith.constant 0 : index
    %c0_13 = arith.constant 0 : index
    %15 = vector.load %arg6[%c0_12, %c0_13] : memref<16x128xbf16, #tpu.memory_space<vmem>>, vector<16x128xbf16>
    tpu.vector_store %arg6[%c0_12, %c0_13], %14 {strides = array<i32>} : memref<16x128xbf16, #tpu.memory_space<vmem>>, vector<16x128xbf16>,
    return
  }
  func.func @transform_0(%arg0: i32) -> (i32, i32) {
    %c0_i32 = arith.constant 0 : i32
    %c0_i32_0 = arith.constant 0 : i32
    return %arg0, %c0_i32 : i32, i32
  }
  func.func @transform_1(%arg0: i32) -> (i32, i32) {
    %c0_i32 = arith.constant 0 : i32
    %c0_i32_0 = arith.constant 0 : i32
    %c0_i32_1 = arith.constant 0 : i32
    return %c0_i32, %c0_i32_0 : i32, i32
  }
  func.func @transform_2(%arg0: i32) -> (i32, i32) {
    %c0_i32 = arith.constant 0 : i32
    %c0_i32_0 = arith.constant 0 : i32
    %c0_i32_1 = arith.constant 0 : i32
    return %c0_i32, %c0_i32_0 : i32, i32
  }
  func.func @transform_3(%arg0: i32) -> (i32, i32) {
    %c0_i32 = arith.constant 0 : i32
    %c0_i32_0 = arith.constant 0 : i32
    %c0_i32_1 = arith.constant 0 : i32
    return %c0_i32, %c0_i32_0 : i32, i32
  }
  func.func @transform_4(%arg0: i32) -> (i32, i32) {
    %c0_i32 = arith.constant 0 : i32
    %c0_i32_0 = arith.constant 0 : i32
    %c0_i32_1 = arith.constant 0 : i32
    return %c0_i32, %c0_i32_0 : i32, i32
  }
  func.func @transform_5(%arg0: i32) -> (i32, i32) {
    %c0_i32 = arith.constant 0 : i32
    %c0_i32_0 = arith.constant 0 : i32
    return %arg0, %c0_i32 : i32, i32
  }
}

</mosaic_0001>

<bundles_post_ra>
// kernel: tpu_custom_call.1
= control target key start
LH: loop header
LB: loop body
LE: loop exit
PB: predicated region body
PF: predicated region fallthrough
CT: control target
= control target key end

     0   :  { %10 = vsyncpa [#allocation3], 0  ;;  %s863_s0 = inlined_call_operand.hbm [shape: bf16[16,16], index: 0, kind: input, shape index: {}]   ;;  %s864_s1 = inlined_call_operand.hbm [shape: bf16[16,128], index: 1, kind: input, shape index: {}]   ;;  %s865_s2 = inlined_call_operand.hbm [shape: bf16[128,256], index: 2, kind: input, shape index: {}]   ;;  %s866_s3 = inlined_call_operand.vmem [shape: f32[1,256], index: 3, kind: input, shape index: {}]   ;;  %s867_s4 = inlined_call_operand.hbm [shape: bf16[256,128], index: 4, kind: input, shape index: {}]   ;;  %s868_s5 = inlined_call_operand.hbm [shape: bf16[16,128], index: 5, kind: output, shape index: {}]  }
   0x1   :  { %11 = vsyncpa [#allocation6], 0 }
   0x2   :  { %12 = vsyncpa [#allocation9], 0 }
   0x3   :  { %13 = vsyncpa [#allocation4], 0  ;;  %s739_s18 = smov [#allocation5]   ;;  %s740_s20 = smov [#allocation2]  }
   0x4   :  { %s31_s19 = sshll.u32 %s739_s18, 4  ;;  %s19_s21 = sshll.u32 %s740_s20, 4  ;;  %s32_s19 = int_to_ptr.vmem [resolvable:$true] %s31_s19  ;;  %s781_s21 = int_to_ptr.vmem [resolvable:$true] %s19_s21 }
   0x5   :  { %s621_s24 = scalar_lea.hbm %s864_s1, 128 }
   0x6   :  { %p622_p0 = scmp.ne.s32.totalorder %s864_s1, %s621_s24  ;;  %p625_p1 = scmp.lt.u32.totalorder %s621_s24, %s864_s1 }
   0x8   :  { %p627_p2 = pnand %p625_p1, %p622_p0 }
   0xa   :  { %630 = shalt.err (!%p627_p2)
}
   0xb   :  { %s631_s29 = scalar_lea.vmem %s32_s19, 128  ;;  %p636_p4 = scmp.lt.s32.totalorder %s32_s19, %s32_s19 }
   0xc   :  { %p632_p3 = scmp.ne.s32.totalorder %s32_s19, %s631_s29  ;;  %p637_p5 = scmp.lt.s32.totalorder %s631_s29, %s631_s29 }
   0xe   :  { %p638_p6 = por %p637_p5, %p636_p4 }
  0x10   :  { %p639_p7 = pnand %p638_p6, %p632_p3 }
  0x12   :  { %642 = shalt.err (!%p639_p7)
}
  0x13   :  { %s741_s30 = smov 64   ;;  %s742_s6 = smov 4  }
  0x14   :  { %37 = dma.hbm_to_vmem [thread:$0]  %s864_s1, 128, %s32_s19, [#allocation6], %s741_s30, %s741_s30, %s742_s6  }
  0x15   :  { %s643_s11 = scalar_lea.hbm %s863_s0, 128 }
  0x16   :  { %p644_p8 = scmp.ne.s32.totalorder %s863_s0, %s643_s11  ;;  %p647_p9 = scmp.lt.u32.totalorder %s643_s11, %s863_s0 }
  0x18   :  { %p649_p10 = pnand %p647_p9, %p644_p8 }
  0x1a   :  { %652 = shalt.err (!%p649_p10)
}
  0x1b   :  { %s653_s16 = scalar_lea.vmem %s781_s21, 128  ;;  %p658_p12 = scmp.lt.s32.totalorder %s781_s21, %s781_s21 }
  0x1c   :  { %p654_p11 = scmp.ne.s32.totalorder %s781_s21, %s653_s16  ;;  %p659_p13 = scmp.lt.s32.totalorder %s653_s16, %s653_s16 }
  0x1e   :  { %p660_p0 = por %p659_p13, %p658_p12 }
  0x20   :  { %p661_p1 = pnand %p660_p0, %p654_p11 }
  0x22   :  { %664 = shalt.err (!%p661_p1)
}
  0x23   :  { %25 = dma.hbm_to_vmem [thread:$0]  %s863_s0, 128, %s781_s21, [#allocation3], %s741_s30, %s741_s30, %s742_s6  }
  0x24   :  { %s743_s18 = smov [#allocation7]   ;;  %s665_s23 = scalar_lea.hbm %s865_s2, 2048 }
  0x25   :  { %s43_s19 = sshll.u32 %s743_s18, 4  ;;  %p666_p2 = scmp.ne.s32.totalorder %s865_s2, %s665_s23  ;;  %s44_s19 = int_to_ptr.vmem [resolvable:$true] %s43_s19 }
  0x26   :  { %p669_p3 = scmp.lt.u32.totalorder %s665_s23, %s865_s2 }
  0x28   :  { %p671_p4 = pnand %p669_p3, %p666_p2 }
  0x2a   :  { %674 = shalt.err (!%p671_p4)
}
  0x2b   :  { %s675_s28 = scalar_lea.vmem %s44_s19, 2048  ;;  %p680_p6 = scmp.lt.s32.totalorder %s44_s19, %s44_s19 }
  0x2c   :  { %p676_p5 = scmp.ne.s32.totalorder %s44_s19, %s675_s28  ;;  %p681_p7 = scmp.lt.s32.totalorder %s675_s28, %s675_s28 }
  0x2e   :  { %p682_p8 = por %p681_p7, %p680_p6 }
  0x30   :  { %p683_p9 = pnand %p682_p8, %p676_p5 }
  0x32   :  { %686 = shalt.err (!%p683_p9)
}
  0x33   :  { %s744_s0 = smov 128   ;;  %s745_s21 = smov 8  }
  0x34   :  { %49 = dma.hbm_to_vmem [thread:$0]  %s865_s2, 2048, %s44_s19, [#allocation6], %s744_s0, %s744_s0, %s745_s21  }
  0x35   :  { %s746_s8 = smov [#allocation8]   ;;  %s687_s12 = scalar_lea.hbm %s867_s4, 2048 }
  0x36   :  { %s57_s9 = sshll.u32 %s746_s8, 4  ;;  %p688_p10 = scmp.ne.s32.totalorder %s867_s4, %s687_s12  ;;  %s58_s9 = int_to_ptr.vmem [resolvable:$true] %s57_s9 }
  0x37   :  { %p691_p11 = scmp.lt.u32.totalorder %s687_s12, %s867_s4 }
  0x39   :  { %p693_p12 = pnand %p691_p11, %p688_p10 }
  0x3b   :  { %696 = shalt.err (!%p693_p12)
}
  0x3c   :  { %s697_s1 = scalar_lea.vmem %s58_s9, 2048  ;;  %p702_p0 = scmp.lt.s32.totalorder %s58_s9, %s58_s9 }
  0x3d   :  { %p698_p13 = scmp.ne.s32.totalorder %s58_s9, %s697_s1  ;;  %p703_p1 = scmp.lt.s32.totalorder %s697_s1, %s697_s1 }
  0x3f   :  { %p704_p2 = por %p703_p1, %p702_p0 }
  0x41   :  { %p705_p3 = pnand %p704_p2, %p698_p13 }
  0x43   :  { %708 = shalt.err (!%p705_p3)
}
  0x44   :  { %63 = dma.hbm_to_vmem [thread:$0]  %s867_s4, 2048, %s58_s9, [#allocation9], %s741_s30, %s741_s30, %s742_s6  }
  0x45   :  { %731 = dma.done.wait [#allocation3], 128  }
  0x46   :  { %732 = vsyncadd [#allocation3], 4294967168 }
  0x47   :  { %733 = dma.done.wait [#allocation6], 2176  }
  0x48   :  { %734 = vsyncadd [#allocation6], 4294965120 }
  0x49   :  { %735 = dma.done.wait [#allocation9], 2048  }
  0x4a   :  { %736 = vsyncadd [#allocation9], 4294965248  ;;  %v747_v0 = vmov 0.0   ;;  %vm748_vm0 = vmmov 0   ;;  %v579_v1 = vld [vmem:[#allocation5] sm:$0xff]   ;;  %v580_v2 = vld [vmem:[#allocation2] sm:$0xff]   ;;  %v156_v41 = vlaneseq }
  0x4b   :  { %561 = vmatprep.subr.bf16.mxu0 %v747_v0  ;;  %563 = vmatprep.mubr.msk.bf16.mxu0 %vm748_vm0, %v747_v0  ;;  %vm92_vm1 = vcmask 130048   ;;  %v581_v3 = vld [vmem:[#allocation7 + $0x4] ss:$8 sps:$4 sm:$0xff]   ;;  %v583_v4 = vld [vmem:[#allocation7] ss:$8 sps:$4 sm:$0xff]   ;;  %v749_v19 = vmov 0  }
  0x4c   :  { %562 = vmatpush3.bf16.msra.mxu0 %v579_v1  ;;  %246 = vmatprep.subr.bf16.mxu1 %v581_v3  ;;  %v584_v5 = vld [vmem:[#allocation7 + $0x14] ss:$8 sps:$4 sm:$0xff]   ;;  %v586_v6 = vld [vmem:[#allocation7 + $0x10] ss:$8 sps:$4 sm:$0xff]   ;;  %v587_v7 = vld [vmem:[#allocation7 + $0x24] ss:$8 sps:$4 sm:$0xff]  }
  0x4d   :  { %247 = vmatpush1.bf16.msra.mxu1 %v583_v4  ;;  %v589_v8 = vld [vmem:[#allocation7 + $0x20] ss:$8 sps:$4 sm:$0xff]   ;;  %v590_v9 = vld [vmem:[#allocation7 + $0x34] ss:$8 sps:$4 sm:$0xff]   ;;  %v592_v10 = vld [vmem:[#allocation7 + $0x30] ss:$8 sps:$4 sm:$0xff]   ;;  %278 = vmatprep.mubr.bf16.mxu1 %v749_v19 }
  0x4e   :  { %248 = vmatprep.subr.bf16.mxu1 %v584_v5  ;;  %v593_v11 = vld [vmem:[#allocation7 + $0x44] ss:$8 sps:$4 sm:$0xff]   ;;  %v595_v12 = vld [vmem:[#allocation7 + $0x40] ss:$8 sps:$4 sm:$0xff]   ;;  %v596_v13 = vld [vmem:[#allocation7 + $0x54] ss:$8 sps:$4 sm:$0xff]  }
  0x4f   :  { %564 = vmatmul.mubr.msk.bf16.vlgmr.msra.gmra.mrb[0].mxu0 %vm92_vm1, %v580_v2  ;;  %v598_v14 = vld [vmem:[#allocation7 + $0x50] ss:$8 sps:$4 sm:$0xff]   ;;  %v599_v15 = vld [vmem:[#allocation7 + $0x64] ss:$8 sps:$4 sm:$0xff]   ;;  %v601_v16 = vld [vmem:[#allocation7 + $0x60] ss:$8 sps:$4 sm:$0xff]  }
  0x50   :  { %v602_v17 = vld [vmem:[#allocation7 + $0x74] ss:$8 sps:$4 sm:$0xff]   ;;  %v604_v18 = vld [vmem:[#allocation7 + $0x70] ss:$8 sps:$4 sm:$0xff]   ;;  %v605_v20 = vld [vmem:[#allocation8 + $0x40] sm:$0xff]   ;;  %v157_v42 = vshrl.u32 %v156_v41, 7 }
  0x51   :  { %249 = vmatpush1.bf16.msra.mxu1 %v586_v6  ;;  %v606_v21 = vld [vmem:[#allocation8] sm:$0xff]   ;;  %v607_v22 = vld [vmem:[#allocation8 + $0x48] sm:$0xff]   ;;  %539 = vmatprep.subr.bf16.mxu0 %v605_v20  ;;  %v609_v24 = vld [vmem:[#allocation8 + $0x50] sm:$0xff]  }
  0x52   :  { %250 = vmatprep.subr.bf16.mxu1 %v587_v7  ;;  %540 = vmatpush3.bf16.msra.mxu0 %v606_v21  ;;  %v608_v23 = vld [vmem:[#allocation8 + $0x8] sm:$0xff]   ;;  %v610_v25 = vld [vmem:[#allocation8 + $0x10] sm:$0xff]   ;;  %v611_v26 = vld [vmem:[#allocation8 + $0x58] sm:$0xff]   ;;  %v158_v43 = vsub.s32 0, %v157_v42  ;;  %v162_v45 = vsub.s32 1, %v157_v42 }
  0x53   :  { %541 = vmatprep.subr.bf16.mxu0 %v607_v22  ;;  %v612_v27 = vld [vmem:[#allocation8 + $0x18] sm:$0xff]   ;;  %v613_v28 = vld [vmem:[#allocation8 + $0x60] sm:$0xff]   ;;  %v615_v30 = vld [vmem:[#allocation8 + $0x68] sm:$0xff]  }
  0x54   :  { %v614_v29 = vld [vmem:[#allocation8 + $0x20] sm:$0xff]   ;;  %v616_v36 = vld [vmem:[#allocation8 + $0x28] sm:$0xff]   ;;  %v617_v37 = vld [vmem:[#allocation8 + $0x70] sm:$0xff]  }
  0x55   :  { %251 = vmatpush1.bf16.msra.mxu1 %v589_v8  ;;  %v618_v38 = vld [vmem:[#allocation8 + $0x30] sm:$0xff]   ;;  %v619_v39 = vld [vmem:[#allocation8 + $0x78] sm:$0xff]  }
  0x56   :  { %252 = vmatprep.subr.bf16.mxu1 %v590_v9  ;;  %542 = vmatpush3.bf16.msra.mxu0 %v608_v23  ;;  %v620_v40 = vld [vmem:[#allocation8 + $0x38] sm:$0xff]   ;;  %v154_v44 = vld [vmem:[%s866_s3] sm:$0x3]  ;;  %s750_s3 = smov [#allocation10]  }
  0x57   :  { %543 = vmatprep.subr.bf16.mxu0 %v609_v24  ;;  %v159_v46 = vrot.slane %v154_v44, %v158_v43  ;;  %v163_v47 = vrot.slane %v154_v44, %v162_v45  ;;  %s479_s19 = sshll.u32 %s750_s3, 4  ;;  %s480_s19 = int_to_ptr.vmem [resolvable:$true] %s479_s19 }
  0x58   :  { %s709_s20 = scalar_lea.vmem %s480_s19, 128  ;;  %p714_p5 = scmp.lt.s32.totalorder %s480_s19, %s480_s19 }
  0x59   :  { %253 = vmatpush1.bf16.msra.mxu1 %v592_v10  ;;  %p710_p4 = scmp.ne.s32.totalorder %s480_s19, %s709_s20  ;;  %p715_p6 = scmp.lt.s32.totalorder %s709_s20, %s709_s20 }
  0x5a   :  { %254 = vmatprep.subr.bf16.mxu1 %v593_v11  ;;  %544 = vmatpush3.bf16.msra.mxu0 %v610_v25 }
  0x5b   :  { %545 = vmatprep.subr.bf16.mxu0 %v611_v26  ;;  %p716_p7 = por %p715_p6, %p714_p5 }
  0x5d   :  { %255 = vmatpush1.bf16.msra.mxu1 %v595_v12  ;;  %p717_p8 = pnand %p716_p7, %p710_p4 }
  0x5e   :  { %256 = vmatprep.subr.bf16.mxu1 %v596_v13  ;;  %546 = vmatpush3.bf16.msra.mxu0 %v612_v27 }
  0x5f   :  { %547 = vmatprep.subr.bf16.mxu0 %v613_v28 }
  0x61   :  { %257 = vmatpush1.bf16.msra.mxu1 %v598_v14 }
  0x62   :  { %258 = vmatprep.subr.bf16.mxu1 %v599_v15  ;;  %548 = vmatpush3.bf16.msra.mxu0 %v614_v29 }
  0x63   :  { %549 = vmatprep.subr.bf16.mxu0 %v615_v30 }
  0x65   :  { %259 = vmatpush1.bf16.msra.mxu1 %v601_v16 }
  0x66   :  { %260 = vmatprep.subr.bf16.mxu1 %v602_v17  ;;  %550 = vmatpush3.bf16.msra.mxu0 %v616_v36 }
  0x67   :  { %551 = vmatprep.subr.bf16.mxu0 %v617_v37 }
  0x69   :  { %261 = vmatpush1.bf16.msra.mxu1 %v604_v18 }
  0x6a   :  { %552 = vmatpush3.bf16.msra.mxu0 %v618_v38 }
  0x6b   :  { %553 = vmatprep.subr.bf16.mxu0 %v619_v39 }
  0x6e   :  { %554 = vmatpush3.bf16.msra.mxu0 %v620_v40 }
 0x122   :  { %v130_v31 = vpop.f32.mrb[0].mxu0 }
 0x123   :  { %v565_v32 = vpop.f32.mrb[1].mxu0 }
 0x124   :  { %v133_v33 = vpop.f32.mrb[2].mxu0 }
 0x125   :  { %v137_v34 = vpack.c.bf16 %v133_v33, %v130_v31  ;;  %v566_v35 = vpop.f32.mrb[3].mxu0 }
 0x127   :  { %279 = vmatmul.mubr.bf16.vlgmr.msra.gmra.mrb[0].mxu1 %v137_v34 }
 0x1fa   :  { %v280_v48 = vpop.f32.mrb[0].mxu1 }
 0x1fb   :  { %v281_v49 = vadd.f32 %v280_v48, %v159_v46  ;;  %v282_v50 = vpop.f32.mrb[1].mxu1 }
 0x1fc   :  { %v283_v51 = vadd.f32 %v282_v50, %v163_v47  ;;  %v284_v52 = vpop.f32.mrb[2].mxu1 }
 0x1fd   :  { %v285_v53 = vadd.f32 %v284_v52, %v159_v46  ;;  %v286_v54 = vpop.f32.mrb[3].mxu1  ;;  %v289_v56 = vmax.f32 %v281_v49, 0.0 }
 0x1fe   :  { %v287_v55 = vadd.f32 %v286_v54, %v163_v47  ;;  %v290_v58 = vmax.f32 %v283_v51, 0.0 }
 0x1ff   :  { %v291_v57 = vmax.f32 %v285_v53, 0.0 }
 0x200   :  { %v292_v59 = vmax.f32 %v287_v55, 0.0 }
 0x201   :  { %v293_v60 = vpack.c.bf16 %v291_v57, %v289_v56 }
 0x202   :  { %v294_v61 = vpack.c.bf16 %v292_v59, %v290_v58 }
 0x204   :  { %455 = vmatprep.mubr.bf16.mxu0 %v294_v61 }
 0x205   :  { %456 = vmatmul.mubr.bf16.vlgmr.msra.gmra.mrb[4].mxu0 %v293_v60 }
 0x2d8   :  { %v555_v62 = vpop.f32.mrb[4].mxu0 }
 0x2d9   :  { %v556_v63 = vpop.f32.mrb[5].mxu0 }
 0x2da   :  { %v557_v0 = vadd.f32 %v556_v63, %v555_v62  ;;  %v558_v1 = vpop.f32.mrb[6].mxu0 }
 0x2db   :  { %v559_v2 = vpop.f32.mrb[7].mxu0 }
 0x2dc   :  { %v560_v3 = vadd.f32 %v559_v2, %v558_v1 }
 0x2de   :  { %v535_v4 = vpack.c.bf16 %v560_v3, %v557_v0 }
 0x2e0   :  { %536 = vst [vmem:[#allocation10] sm:$0xff] %v535_v4  }
 0x2e1   :  { %720 = shalt.err (!%p717_p8)
}
 0x2e2   :  { %s721_s24 = scalar_lea.hbm %s868_s5, 128 }
 0x2e3   :  { %p722_p9 = scmp.ne.s32.totalorder %s868_s5, %s721_s24  ;;  %p725_p10 = scmp.lt.u32.totalorder %s721_s24, %s868_s5 }
 0x2e5   :  { %p727_p11 = pnand %p725_p10, %p722_p9 }
 0x2e7   :  { %730 = shalt.err (!%p727_p11)
}
 0x2e8   :  { %485 = dma.vmem_to_hbm [thread:$0]  %s480_s19, 128, %s868_s5, [#allocation4], %s741_s30, %s741_s30, %s742_s6  }
 0x2e9   :  { %737 = dma.done.wait [#allocation4], 128  }
 0x2ea   :  { %738 = vsyncadd [#allocation4], 4294967168 }
 0x2eb   :  { %489 = vsyncpa [#allocation3], 1 }
 0x2ec   :  { %490 = vsyncpa [#allocation6], 1 }
 0x2ed   :  { %491 = vsyncpa [#allocation9], 1 }
 0x2ee   :  { %492 = vsyncpa [#allocation4], 1 }

</bundles_post_ra>
